<compile_context>
chip_gen: v7x
topology: tpu7x:2x2x1
jax: 0.10.0
libtpu: 0.0.40
codegen_flags: <defaults>
</compile_context>

<pallas_src>
import functools

import jax
import jax.numpy as jnp
from jax import lax
from jax.experimental import pallas as pl
from jax.experimental.pallas import tpu as pltpu


def _deconv_gemm_kernel(x_ref, w_ref, b_ref, o_ref, *, act, flatten_lanes):
    # x_ref: (1, TH, W, 9*Cin)  bf16 im2col lhs tile (matmul-ready layout)
    # w_ref: (9*Cin, 4*Cout)    bf16 phase-folded weights (rhs)
    # b_ref: (1, 1, 4*Cout)     f32 bias tiled over the 4 output phases
    # o_ref: (1, TH, W*4*Cout)  (flatten_lanes) or (1, TH, W, 4*Cout)
    th = x_ref.shape[1]
    w_dim = x_ref.shape[2]
    c4 = w_ref.shape[1]

    lhs = x_ref[0]                                         # (TH, W, 9*Cin)
    # Single MXU call per tile: M = TH*W, K = 9*Cin, N = 4*Cout, f32 acc.
    acc = lax.dot_general(lhs, w_ref[...], (((2,), (0,)), ((), ())),
                          preferred_element_type=jnp.float32)   # (TH, W, c4)
    out = acc + b_ref[0]                                   # one VPU add
    if act:
        out = jnp.maximum(out, 0.0)                        # one VPU max
    if flatten_lanes:
        # Small 4*Cout: flatten to a lane-dense slab so stores are unmasked
        # (W*4*Cout lanes).  Only done when 4*Cout < 128 (review item #8).
        o_ref[0] = out.reshape(th, w_dim * c4).astype(o_ref.dtype)
    else:
        o_ref[0] = out.astype(o_ref.dtype)


def _phase_weights(weight_t):
    # weight_t: (Cin, Cout, 5, 5) PyTorch ConvTranspose2d layout.
    # Returns (9, Cin, 4*Cout): tap j = 3*t+u (3x3), column = (a, b, co) phases.
    cin, cout, K, _ = weight_t.shape
    wp = jnp.pad(weight_t, ((0, 0), (0, 0), (0, 6 - K), (0, 6 - K)))
    wp = wp.reshape(cin, cout, 3, 2, 3, 2)        # [ci, co, t, a, u, b]
    wp = jnp.transpose(wp, (2, 4, 0, 3, 5, 1))    # [t, u, ci, a, b, co]
    return wp.reshape(9, cin, 4 * cout)


def _pick_tile_h(H, W, c4, *, min_rows=256, max_tile_bytes=128 * 1024):
    """Row tile: multiple of 8 dividing H, f32 output tile <= ~128 KiB (stays
    near the vreg file, never the old 1 MiB spill-fest), and TH*W >= 256 when
    possible so the gemm M dim fills a 256-wide MXU pass (v6e/v7x)."""
    if H % 8 != 0:
        return H                       # odd H: single tile (full-dim block, always legal)
    divisors = [th for th in range(8, H + 1, 8) if H % th == 0]
    fitting = [th for th in divisors if th * W * c4 * 4 <= max_tile_bytes]
    if not fitting:
        return 8                       # explicit guard: never silently blow past the cap
    big_enough = [th for th in fitting if th * W >= min_rows]
    return min(big_enough) if big_enough else max(fitting)


def _vmem_limit_bytes(need_bytes):
    """Generation-aware VMEM budget: derived from actual buffer sizes, capped
    at half the physical per-core VMEM (64 MiB on v7x, 128 MiB on v5e/v6e)."""
    try:
        cap = getattr(pltpu.get_tpu_info(), "vmem_capacity_bytes", 64 << 20)
    except Exception:                  # query unavailable: assume the v7x floor
        cap = 64 << 20
    return int(min(max(4 * need_bytes, 8 << 20), cap // 2))


def deconv_block(x_nchw, weight_t, bias, *, kernel_size=5, stride=2, act=True,
                 out_dtype=jnp.float32):
    """ConvTranspose2d(k=5, s=2, padding=2, output_padding=1) + optional ReLU.
    x_nchw: (N, Cin, H, W); weight_t: (Cin, Cout, 5, 5); bias: (Cout,).
    Returns (N, Cout, 2H, 2W)."""
    assert kernel_size == 5 and stride == 2, "specialised for k=5, s=2"
    N, cin, H, W = x_nchw.shape
    cout = weight_t.shape[1]
    c4 = 4 * cout
    k9 = 9 * cin

    # ---- wrapper-side layout prep (input is the small tensor) --------------
    # NCHW -> NHWC, bf16, 1-px halo, then im2col over the 3x3 phase taps so
    # the kernel lhs arrives in matmul-ready layout with K = 9*Cin minor.
    x = jnp.transpose(x_nchw, (0, 2, 3, 1)).astype(jnp.bfloat16)
    x = jnp.pad(x, ((0, 0), (1, 1), (1, 1), (0, 0)))
    views = [x[:, 2 - t:2 - t + H, 2 - u:2 - u + W, :]
             for t in range(3) for u in range(3)]          # tap j = 3*t + u
    x_cols = jnp.concatenate(views, axis=-1)               # (N, H, W, 9*Cin)

    w_gemm = _phase_weights(weight_t).reshape(k9, c4).astype(jnp.bfloat16)
    b4 = jnp.tile(bias.astype(jnp.float32), 4).reshape(1, 1, c4)

    th = _pick_tile_h(H, W, c4)
    flatten_lanes = c4 < 128
    kernel = functools.partial(_deconv_gemm_kernel, act=act,
                               flatten_lanes=flatten_lanes)

    if flatten_lanes:
        # NB: stores are unmasked only when W*c4 % 128 == 0 (true for the test
        # shape); otherwise they degrade to masked stores, which is still legal.
        out_shape = jax.ShapeDtypeStruct((N, H, W * c4), out_dtype)
        out_spec = pl.BlockSpec((1, th, W * c4), lambda n, i: (n, i, 0))
    else:
        out_shape = jax.ShapeDtypeStruct((N, H, W, c4), out_dtype)
        out_spec = pl.BlockSpec((1, th, W, c4), lambda n, i: (n, i, 0, 0))

    # VMEM budget from (lane-padded, double-buffered) block sizes.
    out_itemsize = jnp.dtype(out_dtype).itemsize
    in_blk = th * W * max(k9, 128) * 2
    out_blk = th * W * max(c4, 128) * out_itemsize
    const_blk = k9 * max(c4, 128) * 2 + max(c4, 128) * 4
    vmem_limit = _vmem_limit_bytes(2 * (in_blk + out_blk) + const_blk)

    cost = pl.CostEstimate(
        flops=2 * N * H * W * k9 * c4,
        transcendentals=0,
        bytes_accessed=(N * H * W * k9 * 2 + k9 * c4 * 2 + c4 * 4
                        + N * H * W * c4 * out_itemsize))

    # Megacore: shard over batch when N >= 2 (row axis "arbitrary"), so each
    # core's input rows are fetched exactly once; row axis "parallel" for N=1.
    row_sem = "parallel" if N == 1 else "arbitrary"

    y = pl.pallas_call(
        kernel,
        out_shape=out_shape,
        grid_spec=pltpu.PrefetchScalarGridSpec(
            num_scalar_prefetch=0,
            grid=(N, H // th),
            in_specs=[
                pl.BlockSpec((1, th, W, k9), lambda n, i: (n, i, 0, 0)),
                pl.BlockSpec((k9, c4), lambda n, i: (0, 0)),
                pl.BlockSpec((1, 1, c4), lambda n, i: (0, 0, 0)),
            ],
            out_specs=out_spec),
        compiler_params=pltpu.CompilerParams(
            dimension_semantics=("parallel", row_sem),
            vmem_limit_bytes=vmem_limit),
        cost_estimate=cost,
    )(x_cols, w_gemm, b4)

    # Pixel shuffle + NCHW: a single fused XLA transpose — the mandatory NCHW
    # materialisation, not an extra compute pass.
    y = y.reshape(N, H, W, 2, 2, cout)               # [n, r, c, a, b, co]
    y = jnp.transpose(y, (0, 5, 1, 3, 2, 4))         # [n, co, r, a, c, b]
    return y.reshape(N, cout, 2 * H, 2 * W)


def _reference(x_nchw, weight_t, bias, *, kernel_size=5, stride=2, act=True):
    """Pure-JAX f32 reference for ConvTranspose2d + ReLU (PyTorch semantics)."""
    K = kernel_size
    pad = K // 2
    out_pad = stride - 1
    x = jnp.transpose(x_nchw, (0, 2, 3, 1))
    w_conv = jnp.transpose(jnp.flip(weight_t, axis=(2, 3)), (2, 3, 0, 1))  # HWIO
    lo = K - 1 - pad
    hi = K - 1 - pad + out_pad
    y = lax.conv_general_dilated(
        x, w_conv, window_strides=(1, 1),
        padding=((lo, hi), (lo, hi)),
        lhs_dilation=(stride, stride),
        dimension_numbers=('NHWC', 'HWIO', 'NHWC'))
    y = y + bias.reshape(1, 1, 1, -1)
    if act:
        y = jnp.maximum(y, 0.0)
    return jnp.transpose(y, (0, 3, 1, 2))


if __name__ == "__main__":
    key = jax.random.PRNGKey(0)
    kx, kw, kb = jax.random.split(key, 3)

    N, Cin, H, W = 2, 4, 16, 16
    Cout, K, stride = 8, 5, 2

    x = jax.random.normal(kx, (N, Cin, H, W), jnp.float32)
    weight_t = 0.1 * jax.random.normal(kw, (Cin, Cout, K, K), jnp.float32)
    bias = 0.1 * jax.random.normal(kb, (Cout,), jnp.float32)

    run = jax.jit(functools.partial(deconv_block, kernel_size=K, stride=stride))
    out = jax.block_until_ready(run(x, weight_t, bias))

    ref = _reference(x, weight_t, bias, kernel_size=K, stride=stride)
    assert out.shape == (N, Cout, H * stride, W * stride), out.shape
    # bf16 MXU inputs with f32 accumulation -> looser tolerance than pure f32.
    assert jnp.allclose(out, ref, atol=3e-2, rtol=3e-2), \
        float(jnp.max(jnp.abs(out - ref)))

    print("KERNEL_OK")
</pallas_src>

<mosaic_0001>
module attributes {stable_mosaic.version = 11 : i64} {
  func.func @_deconv_gemm_kernel(%arg0: i32, %arg1: i32, %arg2: memref<1x16x16x36xbf16, #tpu.memory_space<vmem>>, %arg3: memref<36x32xbf16, #tpu.memory_space<vmem>>, %arg4: memref<1x1x32xf32, #tpu.memory_space<vmem>>, %arg5: memref<1x16x512xf32, #tpu.memory_space<vmem>>) attributes {dimension_semantics = [#tpu.dimension_semantics<parallel>, #tpu.dimension_semantics<arbitrary>], iteration_bounds = array<i64: 2, 1>, scalar_prefetch = 0 : i64, scratch_operands = 0 : i64, tpu.core_type = #tpu.core_type<tc>, window_params = [{transform_indices = @transform_0, window_bounds = array<i64: 1, 16, 16, 36>}, {pipeline_mode = #tpu.pipeline_mode<synchronous>, transform_indices = @transform_1, window_bounds = array<i64: 36, 32>}, {pipeline_mode = #tpu.pipeline_mode<synchronous>, transform_indices = @transform_2, window_bounds = array<i64: 1, 1, 32>}, {transform_indices = @transform_3, window_bounds = array<i64: 1, 16, 512>}]} {
    %c0 = arith.constant 0 : index
    %c0_0 = arith.constant 0 : index
    %c0_1 = arith.constant 0 : index
    %c0_2 = arith.constant 0 : index
    %0 = vector.load %arg2[%c0, %c0_0, %c0_1, %c0_2] : memref<1x16x16x36xbf16, #tpu.memory_space<vmem>>, vector<1x16x16x36xbf16>
    %1 = vector.shape_cast %0 : vector<1x16x16x36xbf16> to vector<16x16x36xbf16>
    %c0_3 = arith.constant 0 : index
    %c0_4 = arith.constant 0 : index
    %2 = vector.load %arg3[%c0_3, %c0_4] : memref<36x32xbf16, #tpu.memory_space<vmem>>, vector<36x32xbf16>
    %cst = arith.constant dense<0.000000e+00> : vector<16x16x32xf32>
    %3 = tpu.matmul %1, %2, %cst {dimension_numbers = #tpu.dot_dimension_numbers<[2], [0], [0, 1], [1], [0, 0, 0, 1, 1, 1], [], []>} : vector<16x16x36xbf16>, vector<36x32xbf16>, vector<16x16x32xf32> -> vector<16x16x32xf32>
    %c0_5 = arith.constant 0 : index
    %c0_6 = arith.constant 0 : index
    %c0_7 = arith.constant 0 : index
    %4 = vector.load %arg4[%c0_5, %c0_6, %c0_7] : memref<1x1x32xf32, #tpu.memory_space<vmem>>, vector<1x1x32xf32>
    %5 = vector.shape_cast %4 : vector<1x1x32xf32> to vector<1x32xf32>
    %6 = vector.shape_cast %5 : vector<1x32xf32> to vector<1x1x32xf32>
    %7 = vector.broadcast %6 : vector<1x1x32xf32> to vector<16x16x32xf32>
    %8 = arith.addf %3, %7 : vector<16x16x32xf32>
    %cst_8 = arith.constant 0.000000e+00 : f32
    %9 = vector.broadcast %cst_8 : f32 to vector<16x16x32xf32>
    %10 = arith.maximumf %8, %9 : vector<16x16x32xf32>
    %11 = vector.shape_cast %10 : vector<16x16x32xf32> to vector<16x512xf32>
    %c0_9 = arith.constant 0 : index
    %c0_10 = arith.constant 0 : index
    %c0_11 = arith.constant 0 : index
    %12 = vector.load %arg5[%c0_9, %c0_10, %c0_11] : memref<1x16x512xf32, #tpu.memory_space<vmem>>, vector<1x16x512xf32>
    %13 = vector.shape_cast %12 : vector<1x16x512xf32> to vector<16x512xf32>
    %14 = vector.shape_cast %11 : vector<16x512xf32> to vector<1x16x512xf32>
    tpu.vector_store %arg5[%c0_9, %c0_10, %c0_11], %14 {strides = array<i32>} : memref<1x16x512xf32, #tpu.memory_space<vmem>>, vector<1x16x512xf32>,
    return
  }
  func.func @transform_0(%arg0: i32, %arg1: i32) -> (i32, i32, i32, i32) {
    %c0_i32 = arith.constant 0 : i32
    %c0_i32_0 = arith.constant 0 : i32
    %c0_i32_1 = arith.constant 0 : i32
    return %arg0, %arg1, %c0_i32, %c0_i32_0 : i32, i32, i32, i32
  }
  func.func @transform_1(%arg0: i32, %arg1: i32) -> (i32, i32) {
    %c0_i32 = arith.constant 0 : i32
    %c0_i32_0 = arith.constant 0 : i32
    %c0_i32_1 = arith.constant 0 : i32
    return %c0_i32, %c0_i32_0 : i32, i32
  }
  func.func @transform_2(%arg0: i32, %arg1: i32) -> (i32, i32, i32) {
    %c0_i32 = arith.constant 0 : i32
    %c0_i32_0 = arith.constant 0 : i32
    %c0_i32_1 = arith.constant 0 : i32
    %c0_i32_2 = arith.constant 0 : i32
    return %c0_i32, %c0_i32_0, %c0_i32_1 : i32, i32, i32
  }
  func.func @transform_3(%arg0: i32, %arg1: i32) -> (i32, i32, i32) {
    %c0_i32 = arith.constant 0 : i32
    %c0_i32_0 = arith.constant 0 : i32
    return %arg0, %arg1, %c0_i32 : i32, i32, i32
  }
}

</mosaic_0001>

<bundles_post_ra>
// kernel: tile.8
= control target key start
LH: loop header
LB: loop body
LE: loop exit
PB: predicated region body
PF: predicated region fallthrough
CT: control target
= control target key end

     0   :  { %s22_s0 = inlined_call_operand.vmem [shape: f32[8], index: 0, kind: input, shape index: {}]   ;;  %s23_s1 = inlined_call_operand.vmem [shape: f32[4,8], index: 1, kind: output, shape index: {}]  }
   0x1   :  { %v4_v0 = vld [vmem:[%s22_s0] ss:$0 sm:$0xff] }
   0x2   :  { %5 = vst [vmem:[%s23_s1] sm:$0xf] %v4_v0 }

// kernel: tile.9
= control target key start
LH: loop header
LB: loop body
LE: loop exit
PB: predicated region body
PF: predicated region fallthrough
CT: control target
= control target key end

     0   :  { %vm7_vm0 = vcmask 64512   ;;  %s37_s8 = smov 8   ;;  %s38_s9 = smov 16   ;;  %vm13_vm1 = vcmask 261312   ;;  %vm19_vm2 = vcmask 195712   ;;  %vm25_vm3 = vcmask 130112   ;;  %s55_s0 = inlined_call_operand.vmem [shape: f32[4,8], index: 0, kind: input, shape index: {}]   ;;  %s56_s1 = inlined_call_operand.vmem [shape: f32[1,1,32], index: 1, kind: output, shape index: {}]  }
   0x1   :  { %v4_v0 = vld [vmem:[%s55_s0] sm:$0xf]  ;;  %s36_s0 = smov 24  }
   0x2   :  { %5 = vst [vmem:[#allocation1] sm:$0xf] %v4_v0 }
   0x9   :  { %v10_v1 = vld [vmem:[#allocation1 + $0x3] sm:$0x1]   ;;  %v22_v2 = vld [vmem:[#allocation1 + $0x1] sm:$0x1]   ;;  %v6_v3 = vld [vmem:[#allocation1] sm:$0x1]  }
   0xa   :  { %11 = vrot.lane.b32.xlu0 %v10_v1, %s36_s0  ;;  %23 = vrot.lane.b32.xlu1 %v22_v2, %s37_s8  ;;  %v16_v4 = vld [vmem:[#allocation1 + $0x2] sm:$0x1]   ;;  %8 = vst.msk [vmem:[#allocation0] sm:$0x1] %vm7_vm0, %v6_v3  }
   0xe   :  { %17 = vrot.lane.b32.xlu0 %v16_v4, %s38_s9 }
  0x7c   :  { %v12_v5 = vpop.permute.xlu0 %11   ;;  %v24_v6 = vpop.permute.xlu1 %23  }
  0x7d   :  { %14 = vst.msk [vmem:[#allocation0] sm:$0x1] %vm13_vm1, %v12_v5  }
  0x80   :  { %v18_v7 = vpop.permute.xlu0 %17  }
  0x81   :  { %20 = vst.msk [vmem:[#allocation0] sm:$0x1] %vm19_vm2, %v18_v7  }
  0x82   :  { %26 = vst.msk [vmem:[#allocation0] sm:$0x1] %vm25_vm3, %v24_v6  }
  0x89   :  { %v30_v8 = vld [vmem:[#allocation0] sm:$0x1] }
  0x8a   :  { %32 = vst [vmem:[%s56_s1] sm:$0x1] %v30_v8 }

// kernel: deconv_block.1
= control target key start
LH: loop header
LB: loop body
LE: loop exit
PB: predicated region body
PF: predicated region fallthrough
CT: control target
= control target key end

     0   :  { %s1583_s12 = smov 0   ;;  %s1585_s13 = smov 0   ;;  %s2060_s0 = inlined_call_operand.vmem [shape: bf16[2,16,16,36], index: 0, kind: input, shape index: {}]   ;;  %s2061_s1 = inlined_call_operand.vmem [shape: bf16[36,32], index: 1, kind: input, shape index: {}]   ;;  %s2062_s2 = inlined_call_operand.vmem [shape: f32[1,1,32], index: 2, kind: input, shape index: {}]   ;;  %s2063_s3 = inlined_call_operand.vmem [shape: f32[2,16,512], index: 3, kind: output, shape index: {}]  }
   0x1   :  { %s1587_s14 = smov 0  }
   0x2 LB: > { %s25_s15 = sadd.s32 1, %s1552_s13  ;;  %p1376_p0 = scmp.ge.s32.totalorder %s1556_s14, 1  ;;  %s1556_s14 = sphi %s1587_s14, %s13_s14   ;;  %s1552_s13 = sphi %s1585_s13, %s2065_s13   ;;  %s1548_s12 = sphi %s1583_s12, %s2064_s12  }
   0x3   : > { %p27_p1 = scmp.ge.s32.totalorder %s25_s15, 2  ;;  %p159_p2 = scmp.lt.s32.totalorder %s1556_s14, 3 }
   0x5   : > { %s2067_s15 = smov (%p27_p1, %s25_s15), 0  ;;  %p160_p3 = pnand %p1376_p0, %p159_p2 }
   0x6   : > { %v1515_v0 = vld [vmem:[%s2061_s1] sm:$0xff] (!%p160_p3)   ;;  %v1516_v1 = vld [vmem:[%s2061_s1 + $0x8] sm:$0xff] (!%p160_p3)   ;;  %p194_p4 = scmp.lt.s32.totalorder (!%p160_p3), %s1548_s12, 1  ;;  %v1517_v2 = vld [vmem:[%s2061_s1 + $0x10] ss:$0 sps:$4 sm:$0x33] (!%p160_p3)   ;;  %v606_v22 = vlaneseq (!%p160_p3) }
   0x7   : > { %163 = sbr.rel (%p160_p3) target bundleno = 440 (0x1b8), region = 32  ;;  %1440 = vmatprep.subr.bf16.mxu0 (!%p160_p3), %v1515_v0  ;;  %1478 = vmatprep.subr.bf16.mxu1 (!%p160_p3), %v1515_v0  ;;  %vm404_vm0 = vcmask (!%p160_p3), 1041408   ;;  %vm355_vm1 = vcmask (!%p160_p3), 293888   ;;  %v1558_v20 = vmov (!%p160_p3), 1983009808   ;;  %s1560_s28 = smov (!%p160_p3), 32  }
   0x8   : > { %1441 = vmatpush3.bf16.msra.mxu0 (!%p160_p3), %v1515_v0  ;;  %1481 = vmatpush3.bf16.msra.mxu1 (!%p160_p3), %v1515_v0  ;;  %v406_v4 = vsel (!%p160_p3), %vm404_vm0, %v1517_v2, 0  ;;  %v604_v21 = vunpack.c.l.s4 (!%p160_p3), %v1558_v20  ;;  %v1559_v23 = vmov (!%p160_p3), 1934713408   ;;  %v1653_v27 = vld [vmem:[%s2062_s2] ss:$0 sm:$0xff] (!%p160_p3)  ;;  %v607_v35 = vshrl.u32 (!%p160_p3), %v606_v22, 7 }
   0x9   : > { %1442 = vmatprep.subr.bf16.mxu0 (!%p160_p3), %v1516_v1  ;;  %1479 = vmatprep.subr.bf16.mxu1 (!%p160_p3), %v1516_v1  ;;  %v668_v24 = vunpack.c.l.s4 (!%p160_p3), %v1559_v23  ;;  %s1561_s29 = smov (!%p160_p3), 64   ;;  %s1562_s30 = smov (!%p160_p3), 96   ;;  %vm1241_vm2 = vcmask (!%p160_p3), 261120   ;;  %vm1244_vm3 = vcmask (!%p160_p3), 523264   ;;  %vm1247_vm4 = vcmask (!%p160_p3), 785408  }
   0xa   : > { %v605_v34 = vunpack.c.0.s8 (!%p160_p3), %v604_v21 }
   0xb   : > { %v669_v36 = vunpack.c.0.s8 (!%p160_p3), %v668_v24 }
   0xc   : > { %1443 = vmatpush3.bf16.msra.mxu0 (!%p160_p3), %v1516_v1  ;;  %1482 = vmatpush3.bf16.msra.mxu1 (!%p160_p3), %v1516_v1  ;;  %v1671_v45 = vsub.s32 (!%p160_p3), %v605_v34, %v607_v35 }
   0xd   : > { %1484 = vmatprep.subr.msk.bf16.mxu0 (!%p160_p3), %vm404_vm0, %v1517_v2  ;;  %1485 = vmatprep.subr.msk.bf16.mxu1 (!%p160_p3), %vm404_vm0, %v1517_v2  ;;  %v1673_v46 = vsub.s32 (!%p160_p3), %v669_v36, %v607_v35 }
   0xe   : > { %s2069_s12 = smov (!%p194_p4, %s1548_s12), 1 }
   0xf   : > { %s1419_s22 = sshll.u32 %s2069_s12, 7  ;;  %s1420_s4 = sshll.u32 %s2069_s12, 6 }
  0x10   : > { %s1616_s25 = scalar_lea.vmem %s2060_s0, %s1419_s22  ;;  %1445 = vmatpush3.bf16.msra.mxu0 %v406_v4  ;;  %1483 = vmatpush3.bf16.msra.mxu1 %v406_v4  ;;  %s2004_s7 = scalar_lea.vmem %s2063_s3, %s1420_s4 }
  0x11   : > { %v1518_v3 = vld [vmem:[%s1616_s25] sm:$0xff]   ;;  %v1520_v6 = vld [vmem:[%s1616_s25 + $0x8] sm:$0xff]   ;;  %v1522_v8 = vld [vmem:[%s1616_s25 + $0x10] sm:$0xff]  }
  0x12   : > { %v1519_v5 = vld [vmem:[%s1616_s25 + $0x40] sm:$0xff]   ;;  %1446 = vmatprep.mubr.msk.bf16.mxu0 %vm355_vm1, %v1518_v3  ;;  %v1521_v7 = vld [vmem:[%s1616_s25 + $0x48] sm:$0xff]   ;;  %v1523_v9 = vld [vmem:[%s1616_s25 + $0x50] sm:$0xff]  }
  0x13   : > { %1462 = vmatprep.mubr.msk.bf16.mxu1 %vm355_vm1, %v1519_v5  ;;  %1447 = vmatmul.mubr.msk.bf16.vlgmr.msra.gmra.mrb[0].mxu0 %vm355_vm1, %v1520_v6  ;;  %v1524_v10 = vld [vmem:[%s1616_s25 + $0x18] sm:$0xff]   ;;  %v1526_v12 = vld [vmem:[%s1616_s25 + $0x20] sm:$0xff]   ;;  %v1528_v14 = vld [vmem:[%s1616_s25 + $0x28] sm:$0xff]  }
  0x14   : > { %1463 = vmatmul.mubr.msk.bf16.vlgmr.msra.gmra.mrb[0].mxu1 %vm355_vm1, %v1521_v7  ;;  %1450 = vmatprep.mubr.msk.bf16.mxu0 %vm355_vm1, %v1522_v8  ;;  %v1525_v11 = vld [vmem:[%s1616_s25 + $0x58] sm:$0xff]   ;;  %v1527_v13 = vld [vmem:[%s1616_s25 + $0x60] sm:$0xff]   ;;  %v1529_v15 = vld [vmem:[%s1616_s25 + $0x68] sm:$0xff]  }
  0x15   : > { %1466 = vmatprep.mubr.msk.bf16.mxu1 %vm355_vm1, %v1523_v9  ;;  %v1530_v16 = vld [vmem:[%s1616_s25 + $0x30] sm:$0xff]   ;;  %v1532_v18 = vld [vmem:[%s1616_s25 + $0x38] sm:$0xff]  }
  0x16   : > { %v1531_v17 = vld [vmem:[%s1616_s25 + $0x70] sm:$0xff]   ;;  %v1533_v19 = vld [vmem:[%s1616_s25 + $0x78] sm:$0xff]  }
  0x1b   : > { %1451 = vmatmul.mubr.msk.bf16.gmra.mrb[4].mxu0 %vm355_vm1, %v1524_v10 }
  0x1c   : > { %1467 = vmatmul.mubr.msk.bf16.gmra.mrb[4].mxu1 %vm355_vm1, %v1525_v11  ;;  %1454 = vmatprep.mubr.msk.bf16.mxu0 %vm355_vm1, %v1526_v12 }
  0x1d   : > { %1470 = vmatprep.mubr.msk.bf16.mxu1 %vm355_vm1, %v1527_v13 }
  0x23   : > { %1455 = vmatmul.mubr.msk.bf16.gmra.mrb[8].mxu0 %vm355_vm1, %v1528_v14 }
  0x24   : > { %1471 = vmatmul.mubr.msk.bf16.gmra.mrb[8].mxu1 %vm355_vm1, %v1529_v15  ;;  %1458 = vmatprep.mubr.msk.bf16.mxu0 %vm355_vm1, %v1530_v16 }
  0x25   : > { %1474 = vmatprep.mubr.msk.bf16.mxu1 %vm355_vm1, %v1531_v17 }
  0x2b   : > { %1459 = vmatmul.mubr.msk.bf16.gmra.mrb[12].mxu0 %vm355_vm1, %v1532_v18 }
  0x2c   : > { %1475 = vmatmul.mubr.msk.bf16.gmra.mrb[12].mxu1 %vm355_vm1, %v1533_v19 }
  0xe6   : > { %v1448_v25 = vpop.f32.mrb[0].mxu0 }
  0xe7   : > { %v1464_v26 = vpop.f32.mrb[0].mxu1  ;;  %v442_v28 = vpop.f32.mrb[1].mxu0  ;;  %v451_v37 = vadd.f32 %v1448_v25, %v1653_v27 }
  0xe8   : > { %v506_v29 = vpop.f32.mrb[1].mxu1  ;;  %v1449_v30 = vpop.f32.mrb[2].mxu0  ;;  %v443_v38 = vadd.f32 %v1653_v27, %v442_v28  ;;  %v515_v39 = vadd.f32 %v1464_v26, %v1653_v27 }
  0xe9   : > { %v1465_v31 = vpop.f32.mrb[2].mxu1  ;;  %v445_v32 = vpop.f32.mrb[3].mxu0  ;;  %v507_v40 = vadd.f32 %v1653_v27, %v506_v29  ;;  %v1660_v41 = vadd.f32 %v1449_v30, %v1653_v27  ;;  %v571_v47 = vmax.f32 %v451_v37, 0.0 }
  0xea   : > { %v509_v33 = vpop.f32.mrb[3].mxu1  ;;  %v1663_v42 = vadd.f32 %v1465_v31, %v1653_v27  ;;  %v1666_v43 = vadd.f32 %v1653_v27, %v445_v32  ;;  %v569_v48 = vmax.f32 %v443_v38, 0.0  ;;  %v587_v49 = vmax.f32 %v515_v39, 0.0 }
  0xeb   : > { %v1669_v44 = vadd.f32 %v1653_v27, %v509_v33  ;;  %v585_v50 = vmax.f32 %v507_v40, 0.0  ;;  %v572_v53 = vmax.f32 %v1660_v41, 0.0 }
  0xec   : > { %v588_v54 = vmax.f32 %v1663_v42, 0.0  ;;  %v570_v59 = vmax.f32 %v1666_v43, 0.0 }
  0xed   : > { %v586_v60 = vmax.f32 %v1669_v44, 0.0 }
  0xee   : > { %v1452_v51 = vpop.f32.mrb[4].mxu0 }
  0xef   : > { %v1468_v52 = vpop.f32.mrb[4].mxu1  ;;  %v467_v55 = vadd.f32 %v1452_v51, %v1653_v27  ;;  %v458_v57 = vpop.f32.mrb[5].mxu0 }
  0xf0   : > { %v531_v56 = vadd.f32 %v1468_v52, %v1653_v27  ;;  %v522_v58 = vpop.f32.mrb[5].mxu1  ;;  %v459_v61 = vadd.f32 %v1653_v27, %v458_v57  ;;  %v1453_v63 = vpop.f32.mrb[6].mxu0 }
  0xf1   : > { %v523_v62 = vadd.f32 %v1653_v27, %v522_v58  ;;  %v1469_v0 = vpop.f32.mrb[6].mxu1  ;;  %v575_v1 = vmax.f32 %v467_v55, 0.0  ;;  %v470_v3 = vadd.f32 %v1453_v63, %v1653_v27  ;;  %v461_v5 = vpop.f32.mrb[7].mxu0 }
  0xf2   : > { %v591_v2 = vmax.f32 %v531_v56, 0.0  ;;  %v534_v4 = vadd.f32 %v1469_v0, %v1653_v27  ;;  %v525_v6 = vpop.f32.mrb[7].mxu1  ;;  %v573_v7 = vmax.f32 %v459_v61, 0.0  ;;  %v462_v9 = vadd.f32 %v1653_v27, %v461_v5 }
  0xf3   : > { %v589_v8 = vmax.f32 %v523_v62, 0.0  ;;  %v526_v10 = vadd.f32 %v1653_v27, %v525_v6  ;;  %v617_v11 = vcombine.low %v571_v47, %v575_v1  ;;  %v618_v12 = vcombine.high %v571_v47, %v575_v1 }
  0xf4   : > { %v753_v13 = vcombine.low %v587_v49, %v591_v2  ;;  %v754_v14 = vcombine.high %v587_v49, %v591_v2  ;;  %v601_v15 = vcombine.low %v569_v48, %v573_v7  ;;  %v602_v16 = vcombine.high %v569_v48, %v573_v7 }
  0xf5   : > { %v737_v17 = vcombine.low %v585_v50, %v589_v8  ;;  %v738_v18 = vcombine.high %v585_v50, %v589_v8  ;;  %v1688_v19 = vrot.slane %v617_v11, %v1671_v45  ;;  %v1691_v20 = vrot.slane %v618_v12, %v1671_v45 }
  0xf6   : > { %v1694_v21 = vrot.slane %v753_v13, %v1671_v45  ;;  %v1697_v22 = vrot.slane %v754_v14, %v1671_v45  ;;  %v1700_v23 = vrot.slane %v601_v15, %v1671_v45  ;;  %v1703_v24 = vrot.slane %v602_v16, %v1671_v45  ;;  %v1456_v28 = vpop.f32.mrb[8].mxu0 }
  0xf7   : > { %v1706_v25 = vrot.slane %v737_v17, %v1671_v45  ;;  %v1709_v26 = vrot.slane %v738_v18, %v1671_v45  ;;  %v1472_v29 = vpop.f32.mrb[8].mxu1  ;;  %v576_v30 = vmax.f32 %v470_v3, 0.0  ;;  %v592_v31 = vmax.f32 %v534_v4, 0.0  ;;  %v474_v34 = vpop.f32.mrb[9].mxu0 }
  0xf8   : > { %v574_v32 = vmax.f32 %v462_v9, 0.0  ;;  %v590_v33 = vmax.f32 %v526_v10, 0.0  ;;  %v538_v35 = vpop.f32.mrb[9].mxu1  ;;  %v666_v36 = vcombine.high %v1700_v23, %v1688_v19  ;;  %v682_v37 = vcombine.high %v1703_v24, %v1691_v20  ;;  %v1457_v40 = vpop.f32.mrb[10].mxu0 }
  0xf9   : > { %v801_v38 = vcombine.low %v1706_v25, %v1694_v21  ;;  %v802_v39 = vcombine.high %v1706_v25, %v1694_v21  ;;  %v1473_v41 = vpop.f32.mrb[10].mxu1  ;;  %v817_v42 = vcombine.low %v1709_v26, %v1697_v22  ;;  %v818_v43 = vcombine.high %v1709_v26, %v1697_v22  ;;  %v477_v48 = vpop.f32.mrb[11].mxu0 }
  0xfa   : > { %v889_v44 = vcombine.low %v572_v53, %v576_v30  ;;  %v890_v47 = vcombine.high %v572_v53, %v576_v30  ;;  %v541_v49 = vpop.f32.mrb[11].mxu1  ;;  %v1025_v50 = vcombine.low %v588_v54, %v592_v31  ;;  %v1026_v51 = vcombine.high %v588_v54, %v592_v31 }
  0xfb   : > { %v873_v52 = vcombine.low %v570_v59, %v574_v32  ;;  %v874_v55 = vcombine.high %v570_v59, %v574_v32  ;;  %v1009_v58 = vcombine.low %v586_v60, %v590_v33  ;;  %v1010_v61 = vcombine.high %v586_v60, %v590_v33 }
  0xfc   : > { %v1724_v56 = vrot.slane %v889_v44, %v1671_v45  ;;  %v1727_v57 = vrot.slane %v890_v47, %v1671_v45  ;;  %v1730_v62 = vrot.slane %v1025_v50, %v1671_v45  ;;  %v1733_v63 = vrot.slane %v1026_v51, %v1671_v45 }
  0xfd   : > { %v1736_v53 = vrot.slane %v873_v52, %v1671_v45  ;;  %v1739_v54 = vrot.slane %v874_v55, %v1671_v45  ;;  %v1742_v59 = vrot.slane %v1009_v58, %v1671_v45  ;;  %v1745_v0 = vrot.slane %v1010_v61, %v1671_v45 }
  0xfe   : > { %v483_v60 = vadd.f32 %v1456_v28, %v1653_v27  ;;  %v475_v1 = vadd.f32 %v1653_v27, %v474_v34  ;;  %v1460_v6 = vpop.f32.mrb[12].mxu0  ;;  %v547_v16 = vadd.f32 %v1472_v29, %v1653_v27  ;;  %v486_v17 = vadd.f32 %v1457_v40, %v1653_v27 }
  0xff   : > { %v937_v2 = vcombine.low %v1736_v53, %v1724_v56  ;;  %v938_v3 = vcombine.high %v1736_v53, %v1724_v56  ;;  %v953_v4 = vcombine.low %v1739_v54, %v1727_v57  ;;  %v954_v5 = vcombine.high %v1739_v54, %v1727_v57  ;;  %v1476_v7 = vpop.f32.mrb[12].mxu1  ;;  %v490_v12 = vpop.f32.mrb[13].mxu0 }
 0x100   : > { %v1073_v8 = vcombine.low %v1742_v59, %v1730_v62  ;;  %v1074_v9 = vcombine.high %v1742_v59, %v1730_v62  ;;  %v1089_v10 = vcombine.low %v1745_v0, %v1733_v63  ;;  %v1090_v11 = vcombine.high %v1745_v0, %v1733_v63  ;;  %v554_v13 = vpop.f32.mrb[13].mxu1  ;;  %v1461_v18 = vpop.f32.mrb[14].mxu0 }
 0x101   : > { %v579_v14 = vmax.f32 %v483_v60, 0.0  ;;  %v577_v15 = vmax.f32 %v475_v1, 0.0  ;;  %v1477_v28 = vpop.f32.mrb[14].mxu1  ;;  %v539_v30 = vadd.f32 %v1653_v27, %v538_v35  ;;  %v1769_v31 = vadd.f32 %v1653_v27, %v477_v48  ;;  %v493_v34 = vpop.f32.mrb[15].mxu0 }
 0x102   : > { %v550_v32 = vadd.f32 %v1473_v41, %v1653_v27  ;;  %v1773_v33 = vadd.f32 %v1653_v27, %v541_v49  ;;  %v557_v44 = vpop.f32.mrb[15].mxu1  ;;  %v595_v47 = vmax.f32 %v547_v16, 0.0  ;;  %v580_v50 = vmax.f32 %v486_v17, 0.0 }
 0x103   : > { %v499_v29 = vadd.f32 %v1460_v6, %v1653_v27  ;;  %v563_v40 = vadd.f32 %v1476_v7, %v1653_v27  ;;  %v593_v51 = vmax.f32 %v539_v30, 0.0  ;;  %v578_v52 = vmax.f32 %v1769_v31, 0.0 }
 0x104   : > { %v596_v35 = vmax.f32 %v550_v32, 0.0  ;;  %v594_v48 = vmax.f32 %v1773_v33, 0.0  ;;  %v491_v41 = vadd.f32 %v1653_v27, %v490_v12  ;;  %v555_v49 = vadd.f32 %v1653_v27, %v554_v13 }
 0x105   : > { %v583_v55 = vmax.f32 %v499_v29, 0.0  ;;  %v599_v58 = vmax.f32 %v563_v40, 0.0  ;;  %v502_v61 = vadd.f32 %v1461_v18, %v1653_v27  ;;  %v566_v60 = vadd.f32 %v1477_v28, %v1653_v27 }
 0x106   : > { %v494_v1 = vadd.f32 %v1653_v27, %v493_v34  ;;  %v558_v6 = vadd.f32 %v1653_v27, %v557_v44  ;;  %v581_v31 = vmax.f32 %v491_v41, 0.0  ;;  %v597_v32 = vmax.f32 %v555_v49, 0.0 }
 0x107   : > { %v649_v7 = vcombine.low %v579_v14, %v583_v55  ;;  %v650_v16 = vcombine.high %v579_v14, %v583_v55  ;;  %v785_v17 = vcombine.low %v595_v47, %v599_v58  ;;  %v786_v30 = vcombine.high %v595_v47, %v599_v58 }
 0x108   : > { %v584_v33 = vmax.f32 %v502_v61, 0.0  ;;  %v600_v29 = vmax.f32 %v566_v60, 0.0  ;;  %v633_v27 = vcombine.low %v577_v15, %v581_v31  ;;  %v634_v14 = vcombine.high %v577_v15, %v581_v31 }
 0x109   : > { %v1786_v12 = vrot.slane %v649_v7, %v1671_v45  ;;  %v1789_v13 = vrot.slane %v650_v16, %v1671_v45  ;;  %v1792_v18 = vrot.slane %v785_v17, %v1671_v45  ;;  %v1795_v28 = vrot.slane %v786_v30, %v1671_v45 }
 0x10a   : > { %v769_v34 = vcombine.low %v593_v51, %v597_v32  ;;  %v770_v44 = vcombine.high %v593_v51, %v597_v32  ;;  %v921_v47 = vcombine.low %v580_v50, %v584_v33  ;;  %v922_v40 = vcombine.high %v580_v50, %v584_v33 }
 0x10b   : > { %v1057_v55 = vcombine.low %v596_v35, %v600_v29  ;;  %v1058_v58 = vcombine.high %v596_v35, %v600_v29  ;;  %v641_v41 = vrot.slane %v633_v27, %v1671_v45  ;;  %v648_v49 = vrot.slane %v634_v14, %v1671_v45 }
 0x10c   : > { %v777_v61 = vrot.slane %v769_v34, %v1671_v45  ;;  %v784_v60 = vrot.slane %v770_v44, %v1671_v45  ;;  %v1802_v7 = vrot.slane %v921_v47, %v1671_v45  ;;  %v1805_v16 = vrot.slane %v922_v40, %v1671_v45 }
 0x10d   : > { %v1808_v15 = vrot.slane %v1057_v55, %v1671_v45  ;;  %v1811_v50 = vrot.slane %v1058_v58, %v1671_v45  ;;  %v698_v51 = vcombine.high %v641_v41, %v1786_v12  ;;  %v714_v35 = vcombine.high %v648_v49, %v1789_v13 }
 0x10e   : > { %v833_v17 = vcombine.low %v777_v61, %v1792_v18  ;;  %v834_v30 = vcombine.high %v777_v61, %v1792_v18  ;;  %v849_v31 = vcombine.low %v784_v60, %v1795_v28  ;;  %v850_v32 = vcombine.high %v784_v60, %v1795_v28 }
 0x10f   : > { %v582_v33 = vmax.f32 %v494_v1, 0.0  ;;  %v598_v29 = vmax.f32 %v558_v6, 0.0  ;;  %v681_v27 = vcombine.low %v1703_v24, %v1691_v20  ;;  %v713_v14 = vcombine.low %v648_v49, %v1789_v13 }
 0x110   : > { %v665_v34 = vcombine.low %v1700_v23, %v1688_v19  ;;  %v697_v44 = vcombine.low %v641_v41, %v1786_v12  ;;  %v832_v21 = vrot.slane %v818_v43, %v1673_v46  ;;  %v864_v25 = vrot.slane %v850_v32, %v1673_v46 }
 0x111   : > { %v905_v47 = vcombine.low %v578_v52, %v582_v33  ;;  %v906_v40 = vcombine.high %v578_v52, %v582_v33  ;;  %v1041_v55 = vcombine.low %v594_v48, %v598_v29  ;;  %v1042_v18 = vcombine.high %v594_v48, %v598_v29 }
 0x112   : > { %v1826_v58 = vrot.slane %v681_v27, %v1673_v46  ;;  %v1829_v1 = vrot.slane %v713_v14, %v1673_v46  ;;  %v1832_v6 = vrot.slane %v665_v34, %v1673_v46  ;;  %v1835_v13 = vrot.slane %v697_v44, %v1673_v46 }
 0x113   : > { %v913_v28 = vrot.slane %v905_v47, %v1671_v45  ;;  %v1839_v12 = vrot.slane %v906_v40, %v1671_v45  ;;  %v1049_v52 = vrot.slane %v1041_v55, %v1671_v45  ;;  %v1056_v48 = vrot.slane %v1042_v18, %v1671_v45 }
 0x114   : > { %v734_v41 = vcombine.high %v1826_v58, %v1829_v1  ;;  %v733_v49 = vcombine.low %v1826_v58, %v1829_v1  ;;  %v730_v61 = vcombine.high %v1832_v6, %v1835_v13  ;;  %v729_v60 = vcombine.low %v1832_v6, %v1835_v13 }
 0x115   : > { %v969_v33 = vcombine.low %v913_v28, %v1802_v7  ;;  %v970_v29 = vcombine.high %v913_v28, %v1802_v7  ;;  %v985_v27 = vcombine.low %v1839_v12, %v1805_v16  ;;  %v986_v45 = vcombine.high %v1839_v12, %v1805_v16 }
 0x116   : > { %v1105_v14 = vcombine.low %v1049_v52, %v1808_v15  ;;  %v1106_v34 = vcombine.high %v1049_v52, %v1808_v15  ;;  %v1121_v44 = vcombine.low %v1056_v48, %v1811_v50  ;;  %v1122_v47 = vcombine.high %v1056_v48, %v1811_v50  ;;  %1171 = vrot.lane.b32.xlu1 %v734_v41, %s1560_s28 }
 0x117   : > { %1147 = vrot.lane.b32.xlu0 %v730_v61, %s1560_s28  ;;  %v1867_v7 = vrot.slane %v817_v42, %v1673_v46  ;;  %v1870_v16 = vrot.slane %v849_v31, %v1673_v46  ;;  %v1876_v15 = vrot.slane %v801_v38, %v1673_v46  ;;  %v1879_v50 = vrot.slane %v833_v17, %v1673_v46 }
 0x118   : > { %v816_v40 = vrot.slane %v802_v39, %v1673_v46  ;;  %v848_v42 = vrot.slane %v834_v30, %v1673_v46  ;;  %v680_v31 = vrot.slane %v666_v36, %v1673_v46  ;;  %v712_v55 = vrot.slane %v698_v51, %v1673_v46 }
 0x119   : > { %v870_v38 = vcombine.high %v1867_v7, %v1870_v16  ;;  %v866_v17 = vcombine.high %v1876_v15, %v1879_v50  ;;  %v696_v19 = vrot.slane %v682_v37, %v1673_v46  ;;  %v728_v23 = vrot.slane %v714_v35, %v1673_v46 }
 0x11a   : > { %v867_v39 = vcombine.low %v816_v40, %v848_v42  ;;  %v731_v30 = vcombine.low %v680_v31, %v712_v55  ;;  %v871_v36 = vcombine.low %v832_v21, %v864_v25  ;;  %v868_v51 = vcombine.high %v816_v40, %v848_v42 }
 0x11b   : > { %1173 = vrot.lane.b32.xlu1 %v870_v38, %s1560_s28  ;;  %1149 = vrot.lane.b32.xlu0 %v866_v17, %s1560_s28  ;;  %v732_v18 = vcombine.high %v680_v31, %v712_v55  ;;  %v735_v22 = vcombine.low %v696_v19, %v728_v23  ;;  %v872_v26 = vcombine.high %v832_v21, %v864_v25 }
 0x11c   : > { %v736_v43 = vcombine.high %v696_v19, %v728_v23  ;;  %v1911_v32 = vrot.slane %v1073_v8, %v1673_v46  ;;  %v1914_v20 = vrot.slane %v1105_v14, %v1673_v46  ;;  %v1920_v24 = vrot.slane %v937_v2, %v1673_v46 }
 0x11d   : > { %v1923_v37 = vrot.slane %v969_v33, %v1673_v46  ;;  %v1929_v35 = vrot.slane %v1089_v10, %v1673_v46  ;;  %v1932_v8 = vrot.slane %v1121_v44, %v1673_v46  ;;  %v1938_v28 = vrot.slane %v953_v4, %v1673_v46 }
 0x11e   : > { %v1941_v2 = vrot.slane %v985_v27, %v1673_v46  ;;  %v1088_v12 = vrot.slane %v1074_v9, %v1673_v46  ;;  %v1138_v10 = vcombine.high %v1911_v32, %v1914_v20  ;;  %v1120_v52 = vrot.slane %v1106_v34, %v1673_v46 }
 0x11f   : > { %1157 = vrot.lane.b32.xlu1 %v867_v39, %s1561_s29  ;;  %1155 = vrot.lane.b32.xlu0 %v731_v30, %s1561_s29  ;;  %v1002_v4 = vcombine.high %v1920_v24, %v1923_v37  ;;  %v1142_v48 = vcombine.high %v1929_v35, %v1932_v8  ;;  %v952_v59 = vrot.slane %v938_v3, %v1673_v46 }
 0x120   : > { %v1006_v62 = vcombine.high %v1938_v28, %v1941_v2  ;;  %v984_v9 = vrot.slane %v970_v29, %v1673_v46  ;;  %v1139_v41 = vcombine.low %v1088_v12, %v1120_v52  ;;  %v1104_v61 = vrot.slane %v1090_v11, %v1673_v46 }
 0x121   : > { %v1136_v33 = vrot.slane %v1122_v47, %v1673_v46  ;;  %v968_v27 = vrot.slane %v954_v5, %v1673_v46  ;;  %v1000_v34 = vrot.slane %v986_v45, %v1673_v46  ;;  %v1140_v56 = vcombine.high %v1088_v12, %v1120_v52 }
 0x122   : > { %v1003_v14 = vcombine.low %v952_v59, %v984_v9  ;;  %v1004_v53 = vcombine.high %v952_v59, %v984_v9  ;;  %v869_v63 = vcombine.low %v1867_v7, %v1870_v16  ;;  %v865_v57 = vcombine.low %v1876_v15, %v1879_v50 }
 0x123   : > { %1181 = vrot.lane.b32.xlu1 %v871_v36, %s1561_s29  ;;  %1179 = vrot.lane.b32.xlu0 %v735_v22, %s1561_s29  ;;  %v1143_v3 = vcombine.low %v1104_v61, %v1136_v33  ;;  %v1144_v29 = vcombine.high %v1104_v61, %v1136_v33  ;;  %v1007_v0 = vcombine.low %v968_v27, %v1000_v34 }
 0x124   : > { %v1008_v11 = vcombine.high %v968_v27, %v1000_v34  ;;  %v1137_v54 = vcombine.low %v1911_v32, %v1914_v20  ;;  %v1001_v46 = vcombine.low %v1920_v24, %v1923_v37  ;;  %v1141_v5 = vcombine.low %v1929_v35, %v1932_v8 }
 0x125   : > { %v1005_v45 = vcombine.low %v1938_v28, %v1941_v2 }
 0x127   : > { %1165 = vrot.lane.b32.xlu1 %v868_v51, %s1562_s30  ;;  %1163 = vrot.lane.b32.xlu0 %v732_v18, %s1562_s30 }
 0x12b   : > { %1189 = vrot.lane.b32.xlu1 %v872_v26, %s1562_s30  ;;  %1187 = vrot.lane.b32.xlu0 %v736_v43, %s1562_s30 }
 0x12f   : > { %1197 = vrot.lane.b32.xlu1 %v1138_v10, %s1560_s28  ;;  %1195 = vrot.lane.b32.xlu0 %v1002_v4, %s1560_s28 }
 0x133   : > { %1221 = vrot.lane.b32.xlu1 %v1142_v48, %s1560_s28  ;;  %1219 = vrot.lane.b32.xlu0 %v1006_v62, %s1560_s28 }
 0x137   : > { %1205 = vrot.lane.b32.xlu1 %v1139_v41, %s1561_s29  ;;  %1203 = vrot.lane.b32.xlu0 %v1003_v14, %s1561_s29 }
 0x13b   : > { %1229 = vrot.lane.b32.xlu1 %v1143_v3, %s1561_s29  ;;  %1227 = vrot.lane.b32.xlu0 %v1007_v0, %s1561_s29 }
 0x13f   : > { %1213 = vrot.lane.b32.xlu1 %v1140_v56, %s1562_s30  ;;  %1211 = vrot.lane.b32.xlu0 %v1004_v53, %s1562_s30 }
 0x143   : > { %1237 = vrot.lane.b32.xlu1 %v1144_v29, %s1562_s30  ;;  %1235 = vrot.lane.b32.xlu0 %v1008_v11, %s1562_s30 }
 0x188   : > { %v1172_v44 = vpop.permute.xlu1 %1171 }
 0x189   : > { %v1148_v47 = vpop.permute.xlu0 %1147 }
 0x18a   : > { %v1242_v31 = vsel %vm1241_vm2, %v729_v60, %v1148_v47  ;;  %v1250_v60 = vsel %vm1241_vm2, %v733_v49, %v1172_v44 }
 0x18d   : > { %v1174_v7 = vpop.permute.xlu1 %1173  ;;  %v1150_v16 = vpop.permute.xlu0 %1149 }
 0x18e   : > { %v1243_v55 = vsel %vm1241_vm2, %v865_v57, %v1150_v16  ;;  %v1251_v39 = vsel %vm1241_vm2, %v869_v63, %v1174_v7 }
 0x191   : > { %v1158_v15 = vpop.permute.xlu1 %1157  ;;  %v1156_v50 = vpop.permute.xlu0 %1155 }
 0x192   : > { %v1246_v38 = vsel %vm1244_vm3, %v1243_v55, %v1158_v15  ;;  %v1245_v17 = vsel %vm1244_vm3, %v1242_v31, %v1156_v50 }
 0x195   : > { %v1182_v40 = vpop.permute.xlu1 %1181  ;;  %v1180_v42 = vpop.permute.xlu0 %1179 }
 0x196   : > { %v1253_v30 = vsel %vm1244_vm3, %v1251_v39, %v1182_v40  ;;  %v1252_v19 = vsel %vm1244_vm3, %v1250_v60, %v1180_v42 }
 0x199   : > { %v1166_v21 = vpop.permute.xlu1 %1165  ;;  %v1164_v25 = vpop.permute.xlu0 %1163 }
 0x19a   : > { %v1249_v6 = vsel %vm1247_vm4, %v1246_v38, %v1166_v21  ;;  %v1248_v13 = vsel %vm1247_vm4, %v1245_v17, %v1164_v25 }
 0x19b   : > { %1272 = vst [vmem:[%s2004_s7 + $0x20] sm:$0xff] %v1249_v6  ;;  %1268 = vst [vmem:[%s2004_s7] sm:$0xff] %v1248_v13 }
 0x19d   : > { %v1190_v23 = vpop.permute.xlu1 %1189  ;;  %v1188_v36 = vpop.permute.xlu0 %1187 }
 0x19e   : > { %v1255_v51 = vsel %vm1247_vm4, %v1253_v30, %v1190_v23  ;;  %v1254_v18 = vsel %vm1247_vm4, %v1252_v19, %v1188_v36 }
 0x19f   : > { %1273 = vst [vmem:[%s2004_s7 + $0x28] sm:$0xff] %v1255_v51  ;;  %1269 = vst [vmem:[%s2004_s7 + $0x8] sm:$0xff] %v1254_v18 }
 0x1a1   : > { %v1198_v22 = vpop.permute.xlu1 %1197  ;;  %v1196_v26 = vpop.permute.xlu0 %1195 }
 0x1a2   : > { %v1257_v4 = vsel %vm1241_vm2, %v1137_v54, %v1198_v22  ;;  %v1256_v52 = vsel %vm1241_vm2, %v1001_v46, %v1196_v26 }
 0x1a5   : > { %v1222_v58 = vpop.permute.xlu1 %1221  ;;  %v1220_v1 = vpop.permute.xlu0 %1219 }
 0x1a6   : > { %v1263_v32 = vsel %vm1241_vm2, %v1141_v5, %v1222_v58  ;;  %v1262_v20 = vsel %vm1241_vm2, %v1005_v45, %v1220_v1 }
 0x1a9   : > { %v1206_v49 = vpop.permute.xlu1 %1205  ;;  %v1204_v43 = vpop.permute.xlu0 %1203 }
 0x1aa   : > { %v1259_v48 = vsel %vm1244_vm3, %v1257_v4, %v1206_v49  ;;  %v1258_v62 = vsel %vm1244_vm3, %v1256_v52, %v1204_v43 }
 0x1ad   : > { %v1230_v12 = vpop.permute.xlu1 %1229  ;;  %v1228_v10 = vpop.permute.xlu0 %1227 }
 0x1ae   : > { %v1265_v24 = vsel %vm1244_vm3, %v1263_v32, %v1230_v12  ;;  %v1264_v37 = vsel %vm1244_vm3, %v1262_v20, %v1228_v10 }
 0x1b1   : > { %v1214_v59 = vpop.permute.xlu1 %1213  ;;  %v1212_v9 = vpop.permute.xlu0 %1211 }
 0x1b2   : > { %v1261_v41 = vsel %vm1247_vm4, %v1259_v48, %v1214_v59  ;;  %v1260_v61 = vsel %vm1247_vm4, %v1258_v62, %v1212_v9 }
 0x1b3   : > { %1274 = vst [vmem:[%s2004_s7 + $0x30] sm:$0xff] %v1261_v41  ;;  %1270 = vst [vmem:[%s2004_s7 + $0x10] sm:$0xff] %v1260_v61 }
 0x1b5   : > { %v1238_v33 = vpop.permute.xlu1 %1237  ;;  %v1236_v27 = vpop.permute.xlu0 %1235 }
 0x1b6   : > { %v1267_v14 = vsel %vm1247_vm4, %v1265_v24, %v1238_v33  ;;  %v1266_v34 = vsel %vm1247_vm4, %v1264_v37, %v1236_v27 }
 0x1b7   : > { %1275 = vst [vmem:[%s2004_s7 + $0x38] sm:$0xff] %v1267_v14  ;;  %1271 = vst [vmem:[%s2004_s7 + $0x18] sm:$0xff] %v1266_v34 }
 0x1b8 PF: > { %s13_s14 = sadd.s32 1, %s1556_s14   ;;  %s2064_s12 = smov %s1552_s13 }
 0x1b9   : > { %p10_p5 = scmp.ge.s32.totalorder %s13_s14, 4   ;;  %s2065_s13 = smov %s2067_s15 }
 0x1bb   :  { %12 = sbr.rel (!%p10_p5) target bundleno = 2 (0x2), region = 62 }

</bundles_post_ra>
